<compile_context>
chip_gen: v6e
topology: v6e:2x2x1
jax: 0.10.0
libtpu: 0.0.40
codegen_flags: <defaults>
</compile_context>

<pallas_src>
from functools import partial

import numpy as np
import jax
import jax.numpy as jnp
from jax.experimental import pallas as pl
from jax.experimental.pallas import tpu as pltpu

# ----- small, module-consistent example config -----
BATCH = 2
IN_CH = 4            # patch_channels
H = W = 16
PH = PW = 4          # patch_size_h / patch_size_w
NH = H // PH         # num_patches_h = 4
NW = W // PW         # num_patches_w = 4
EMBED_DIM = 128      # lane-dense embedding width
POS_MAX_N = 8        # pos_embed_max_n_axis (only first NH / NW rows are used)

MAX_TOKEN_TILE = 256  # token tile cap for large inputs (VMEM-safe on v5e/v6e/v7x)


def _fused_patch_embed_kernel(a_ref, w_ref, out_ref):
    """a:(tile, K+nh+nw)  w:(K+nh+nw, E)  out:(tile, E).

    Single MXU pass: the conv projection AND the positional-embedding add are
    one matmul -- the trailing (nh+nw) columns of `a` are a static one-hot
    selector and the trailing rows of `w` are [pos_y ; pos_x]."""
    out_ref[...] = jnp.dot(
        a_ref[...], w_ref[...], preferred_element_type=jnp.float32
    ).astype(out_ref.dtype)


def _token_selector(batch, nh, nw):
    """Static (B*nh*nw, nh+nw) 0/1 matrix: token b*nh*nw + i*nw + j hits rows i and nh+j."""
    tokens = batch * nh * nw
    r = np.arange(tokens)
    i = (r // nw) % nh
    j = r % nw
    sel = np.zeros((tokens, nh + nw), dtype=np.float32)
    sel[r, i] = 1.0
    sel[r, nh + j] = 1.0
    return sel


@partial(jax.jit, static_argnames=("ph", "pw"))
def _patch_embed_fwd(x, conv_w, pos_x_table, pos_y_table, *, ph, pw):
    B, C, Hh, Ww = x.shape
    E = conv_w.shape[0]
    nh, nw = Hh // ph, Ww // pw
    S = nh * nw
    tokens = B * S
    K = C * ph * pw
    k_aug = K + nh + nw

    # --- layout plumbing, all under this single jit (one dispatch total) ---
    # Non-overlapping patch extraction: the stride==kernel Conv2d as a matmul.
    patches = (x.reshape(B, C, nh, ph, nw, pw)
                .transpose(0, 2, 4, 1, 3, 5)
                .reshape(tokens, K)
                .astype(jnp.bfloat16))
    # Static one-hot selector columns (trace-time numpy constant, exact in bf16).
    sel = jnp.asarray(_token_selector(B, nh, nw), dtype=jnp.bfloat16)
    a_aug = jnp.concatenate([patches, sel], axis=1)             # (tokens, K+nh+nw)

    # One-time parameter prep: reshaped conv weight with [pos_y ; pos_x] stacked
    # under it (in a real model this would be precomputed/cached per layer).
    w_aug = jnp.concatenate(
        [conv_w.reshape(E, K).T, pos_y_table[:nh], pos_x_table[:nw]], axis=0
    ).astype(jnp.bfloat16)                                      # (K+nh+nw, E)

    # --- single fused kernel: projection + positional add ---
    tile = tokens if tokens <= MAX_TOKEN_TILE else MAX_TOKEN_TILE
    assert tokens % tile == 0, "token count must be a multiple of the token tile"

    out = pl.pallas_call(
        _fused_patch_embed_kernel,
        out_shape=jax.ShapeDtypeStruct((tokens, E), jnp.float32),
        grid=(tokens // tile,),
        in_specs=[pl.BlockSpec((tile, k_aug), lambda t: (t, 0)),
                  pl.BlockSpec((k_aug, E), lambda t: (0, 0))],
        out_specs=pl.BlockSpec((tile, E), lambda t: (t, 0)),
        compiler_params=pltpu.CompilerParams(
            dimension_semantics=("parallel",)),
    )(a_aug, w_aug)

    return out.reshape(B, S, E)


def patch_embedding_conv(x, conv_w, pos_x_table, pos_y_table, *, ph=PH, pw=PW):
    """x:(B,C,H,W), conv_w:(E,C,ph,pw), pos_*_table:(max_n,E)
    -> ((B, num_patches, E), (num_patches_h, num_patches_w))"""
    B, C, Hh, Ww = x.shape
    assert Hh % ph == 0 and Ww % pw == 0, "image dims must be divisible by patch size"
    nh, nw = Hh // ph, Ww // pw
    tokens = _patch_embed_fwd(x, conv_w, pos_x_table, pos_y_table, ph=ph, pw=pw)
    return tokens, (nh, nw)


def reference_patch_embedding(x, conv_w, pos_x_table, pos_y_table, *, ph=PH, pw=PW):
    """Pure-JAX f32 reference mirroring the PyTorch forward (real strided conv)."""
    nh, nw = x.shape[2] // ph, x.shape[3] // pw
    y = jax.lax.conv_general_dilated(
        x, conv_w, window_strides=(ph, pw), padding="VALID",
        dimension_numbers=("NCHW", "OIHW", "NCHW"))             # (B, E, nh, nw)
    pos_x = pos_x_table[:nw].T                                  # (E, nw)
    pos_y = pos_y_table[:nh].T                                  # (E, nh)
    y = y + pos_x[None, :, None, :] + pos_y[None, :, :, None]
    B, E = y.shape[0], y.shape[1]
    return y.reshape(B, E, nh * nw).transpose(0, 2, 1)          # (B, S, E)


if __name__ == "__main__":
    key = jax.random.PRNGKey(0)
    kx, kw, kpx, kpy = jax.random.split(key, 4)

    x = jax.random.normal(kx, (BATCH, IN_CH, H, W), dtype=jnp.float32)
    conv_w = (0.05 * jax.random.normal(kw, (EMBED_DIM, IN_CH, PH, PW))).astype(jnp.float32)
    pos_x_table = (0.02 * jax.random.normal(kpx, (POS_MAX_N, EMBED_DIM))).astype(jnp.float32)
    pos_y_table = (0.02 * jax.random.normal(kpy, (POS_MAX_N, EMBED_DIM))).astype(jnp.float32)

    out, (nh, nw) = patch_embedding_conv(x, conv_w, pos_x_table, pos_y_table)
    out = jax.block_until_ready(out)

    ref = reference_patch_embedding(x, conv_w, pos_x_table, pos_y_table)
    assert out.shape == (BATCH, NH * NW, EMBED_DIM), out.shape
    assert (nh, nw) == (NH, NW)
    max_err = float(jnp.max(jnp.abs(out - ref)))
    # bf16 matmul operands (f32 accumulation) vs f32 reference -> relaxed tolerance.
    assert jnp.allclose(out, ref, atol=2e-2, rtol=2e-2), max_err

    print("KERNEL_OK")
</pallas_src>

<mosaic_0001>
module attributes {stable_mosaic.version = 11 : i64} {
  func.func @_fused_patch_embed_kernel(%arg0: i32, %arg1: memref<32x72xbf16, #tpu.memory_space<vmem>>, %arg2: memref<72x128xbf16, #tpu.memory_space<vmem>>, %arg3: memref<32x128xf32, #tpu.memory_space<vmem>>) attributes {dimension_semantics = [#tpu.dimension_semantics<parallel>], iteration_bounds = array<i64: 1>, scalar_prefetch = 0 : i64, scratch_operands = 0 : i64, tpu.core_type = #tpu.core_type<tc>, window_params = [{transform_indices = @transform_0, window_bounds = array<i64: 32, 72>}, {pipeline_mode = #tpu.pipeline_mode<synchronous>, transform_indices = @transform_1, window_bounds = array<i64: 72, 128>}, {transform_indices = @transform_2, window_bounds = array<i64: 32, 128>}]} {
    %c0 = arith.constant 0 : index
    %c0_0 = arith.constant 0 : index
    %0 = vector.load %arg1[%c0, %c0_0] : memref<32x72xbf16, #tpu.memory_space<vmem>>, vector<32x72xbf16>
    %c0_1 = arith.constant 0 : index
    %c0_2 = arith.constant 0 : index
    %1 = vector.load %arg2[%c0_1, %c0_2] : memref<72x128xbf16, #tpu.memory_space<vmem>>, vector<72x128xbf16>
    %cst = arith.constant dense<0.000000e+00> : vector<32x128xf32>
    %2 = tpu.matmul %0, %1, %cst {dimension_numbers = #tpu.dot_dimension_numbers<[1], [0], [0], [1], [0, 0, 1, 1], [], []>} : vector<32x72xbf16>, vector<72x128xbf16>, vector<32x128xf32> -> vector<32x128xf32>
    %c0_3 = arith.constant 0 : index
    %c0_4 = arith.constant 0 : index
    %3 = vector.load %arg3[%c0_3, %c0_4] : memref<32x128xf32, #tpu.memory_space<vmem>>, vector<32x128xf32>
    tpu.vector_store %arg3[%c0_3, %c0_4], %2 {strides = array<i32>} : memref<32x128xf32, #tpu.memory_space<vmem>>, vector<32x128xf32>,
    return
  }
  func.func @transform_0(%arg0: i32) -> (i32, i32) {
    %c0_i32 = arith.constant 0 : i32
    %c0_i32_0 = arith.constant 0 : i32
    return %arg0, %c0_i32 : i32, i32
  }
  func.func @transform_1(%arg0: i32) -> (i32, i32) {
    %c0_i32 = arith.constant 0 : i32
    %c0_i32_0 = arith.constant 0 : i32
    %c0_i32_1 = arith.constant 0 : i32
    return %c0_i32, %c0_i32_0 : i32, i32
  }
  func.func @transform_2(%arg0: i32) -> (i32, i32) {
    %c0_i32 = arith.constant 0 : i32
    %c0_i32_0 = arith.constant 0 : i32
    return %arg0, %c0_i32 : i32, i32
  }
}

</mosaic_0001>

<bundles_post_ra>
// kernel: _patch_embed_fwd.1
= control target key start
LH: loop header
LB: loop body
LE: loop exit
PB: predicated region body
PF: predicated region fallthrough
CT: control target
= control target key end

     0   :  { %vm70_vm0 = vcmask 1043456   ;;  %vm63_vm1 = vcmask 588800   ;;  %s248_s0 = inlined_call_operand.vmem [shape: bf16[32,72], index: 0, kind: input, shape index: {}]   ;;  %s249_s1 = inlined_call_operand.vmem [shape: bf16[72,128], index: 1, kind: input, shape index: {}]   ;;  %s250_s2 = inlined_call_operand.hbm [shape: f32[32,128], index: 2, kind: output, shape index: {}]  }
   0x1   :  { %v177_v0 = vld [vmem:[%s249_s1 + $0x20] ss:$0 sps:$4 sm:$0xff]   ;;  %v178_v1 = vld [vmem:[%s249_s1 + $0x18] sm:$0xff]   ;;  %v179_v3 = vld [vmem:[%s249_s1 + $0x10] sm:$0xff]  }
   0x2   :  { %173 = vmatprep.subr.msk.bf16.mxu0 %vm70_vm0, %v177_v0  ;;  %v72_v2 = vsel %vm70_vm0, %v177_v0, 0  ;;  %v182_v4 = vld [vmem:[%s248_s0] sm:$0xff]  }
   0x3   :  { %160 = vmatpush3.bf16.msra.mxu0 %v72_v2 }
   0x4   :  { %161 = vmatprep.subr.bf16.mxu0 %v178_v1 }
   0x5   :  { %7 = vsyncpa [#allocation3], 0  ;;  %169 = vmatprep.mubr.msk.bf16.mxu0 %vm63_vm1, %v182_v4  ;;  %v180_v5 = vld [vmem:[%s249_s1 + $0x8] sm:$0xff]   ;;  %v181_v6 = vld [vmem:[%s249_s1] sm:$0xff]   ;;  %s206_s23 = smov [#allocation2]  }
   0x6   :  { %v183_v7 = vld [vmem:[%s248_s0 + $0x8] sm:$0xff]   ;;  %s132_s24 = sshll.u32 %s206_s23, 4  ;;  %s133_s24 = int_to_ptr.vmem [resolvable:$true] %s132_s24 }
   0x7   :  { %162 = vmatpush3.bf16.msra.mxu0 %v178_v1  ;;  %s184_s1 = scalar_lea.vmem %s133_s24, 512  ;;  %p189_p1 = scmp.lt.s32.totalorder %s133_s24, %s133_s24 }
   0x8   :  { %163 = vmatprep.subr.bf16.mxu0 %v179_v3  ;;  %p185_p0 = scmp.ne.s32.totalorder %s133_s24, %s184_s1  ;;  %p190_p2 = scmp.lt.s32.totalorder %s184_s1, %s184_s1 }
   0xa   :  { %p191_p3 = por %p190_p2, %p189_p1 }
   0xb   :  { %164 = vmatpush3.bf16.msra.mxu0 %v179_v3 }
   0xc   :  { %165 = vmatprep.subr.bf16.mxu0 %v180_v5  ;;  %p192_p4 = pnand %p191_p3, %p185_p0 }
   0xf   :  { %166 = vmatpush3.bf16.msra.mxu0 %v180_v5 }
  0x10   :  { %167 = vmatprep.subr.bf16.mxu0 %v181_v6 }
  0x13   :  { %168 = vmatpush3.bf16.msra.mxu0 %v181_v6 }
  0x16   :  { %170 = vmatmul.mubr.msk.bf16.vlgmr.msra.gmra.mxu0 %vm63_vm1, %v183_v7 }
  0xd6   :  { %v171_v8 = vpop.f32.mrf.mxu0 }
  0xd7   :  { %125 = vst [vmem:[#allocation2 + $0x10] sm:$0xff] %v171_v8 }
  0xd8   :  { %v108_v9 = vpop.f32.mrf.mxu0 }
  0xd9   :  { %123 = vst [vmem:[#allocation2] sm:$0xff] %v108_v9 }
  0xda   :  { %v172_v10 = vpop.f32.mrf.mxu0 }
  0xdb   :  { %126 = vst [vmem:[#allocation2 + $0x18] sm:$0xff] %v172_v10 }
  0xdc   :  { %v111_v11 = vpop.f32.mrf.mxu0 }
  0xdd   :  { %124 = vst [vmem:[#allocation2 + $0x8] sm:$0xff] %v111_v11 }
  0xde   :  { %195 = shalt.err (!%p192_p4)
}
  0xdf   :  { %s207_s0 = smov 128   ;;  %s208_s25 = smov 8  }
  0xe0   :  { %138 = dma.vmem_to_hbm [thread:$0]  %s133_s24, 512, %s250_s2, [#allocation3], %s207_s0, %s207_s0, %s208_s25  }
  0xe1   :  { %204 = dma.done.wait [#allocation3], 512  }
  0xe2   :  { %205 = vsyncadd [#allocation3], 4294966784 }
  0xe3   :  { %142 = vsyncpa [#allocation3], 1 }

</bundles_post_ra>
